<compile_context>
chip_gen: v7x
topology: tpu7x:2x2x1
jax: 0.10.0
libtpu: 0.0.40
codegen_flags: <defaults>
</compile_context>

<pallas_src>
import functools

import jax
import jax.numpy as jnp
from jax import lax
from jax.experimental import pallas as pl
from jax.experimental.pallas import tpu as pltpu


def _round_up(n, m):
    return (n + m - 1) // m * m


def rnn_kernel(x_ref, wxh_ref, whh_ref, bh_ref, wfc_ref, bfc_ref,
               out_ref, u_ref):
    # x_ref:   (T*Bt, I)  one batch tile, time-major rows (t-major, b-minor)
    # wxh_ref: (I, Hp)    W_xh^T  (bf16 or f32), hidden padded to lane width
    # whh_ref: (Hp, Hp)   W_hh^T  f32
    # bh_ref:  (1, Hp)    f32
    # wfc_ref: (Hp, Cp)   W_fc^T  f32, class dim padded to lane width
    # bfc_ref: (1, Cp)    f32
    # out_ref: (Bt, Cp)   f32, lane-dense output tile
    # u_ref:   (T*Bt, Hp) f32 scratch holding the hoisted input projection
    Bt = out_ref.shape[0]
    Hp = whh_ref.shape[0]
    T = x_ref.shape[0] // Bt

    # Phase 1: batched, h-independent input projection in one MXU matmul.
    u_ref[...] = (
        jnp.dot(x_ref[...], wxh_ref[...], preferred_element_type=jnp.float32)
        + bh_ref[...]
    )

    # Phase 2: serial recurrence. W_hh^T is read once and reused every step;
    # bounded unroll keeps LLO visibility without blowing vreg live ranges.
    whh = whh_ref[...]

    def step(t, h):
        row = pl.multiple_of(t * Bt, Bt)          # sublane-aligned dynamic slice
        u_t = u_ref[pl.ds(row, Bt), :]
        return jnp.maximum(
            u_t + jnp.dot(h, whh, preferred_element_type=jnp.float32), 0.0)

    h_last = lax.fori_loop(0, T, step, jnp.zeros((Bt, Hp), jnp.float32),
                           unroll=min(T, 8))

    # Phase 3: final fully-connected layer; unmasked lane-dense store.
    out_ref[...] = (
        jnp.dot(h_last, wfc_ref[...], preferred_element_type=jnp.float32)
        + bfc_ref[...]
    ).astype(out_ref.dtype)


def _tile_bytes(shape, itemsize):
    """Physical VMEM bytes of a buffer, accounting for (8, 128) tiling."""
    shape = tuple(shape)
    if len(shape) == 1:
        shape = (1,) + shape
    lead = 1
    for d in shape[:-2]:
        lead *= d
    return lead * _round_up(shape[-2], 8) * _round_up(shape[-1], 128) * itemsize


@functools.partial(jax.jit, static_argnames=("input_dtype",))
def vanilla_rnn_forward(x, w_xh, w_hh, b_h, w_fc, b_fc, *,
                        input_dtype=jnp.bfloat16):
    """x: (B, T, I) float32. PyTorch-layout weights:
       w_xh (H, I), w_hh (H, H), b_h (H,), w_fc (C, H), b_fc (C,).
       Returns (B, 1, C), matching Vanilla_RNN.forward."""
    B, T, I = x.shape
    H = w_xh.shape[0]
    C = w_fc.shape[0]

    Hp = _round_up(H, 128)    # lane-dense hidden width (zero pad is exact)
    Cp = _round_up(C, 128)    # lane-dense output width

    # Batch tile: sublane-aligned, capped so the per-block u scratch stays
    # ~<= 8 MiB and the loop-carried h stays comfortably in vregs.
    Bt = min(_round_up(B, 8), 256)
    Bt = min(Bt, max(8, ((8 << 20) // (T * Hp * 4)) // 8 * 8))
    Bp = _round_up(B, Bt)
    nb = Bp // Bt

    # Time-major, batch-pad, then group rows per batch tile so every grid block
    # reads one contiguous (T*Bt, I) slab. Padded rows never mix with real rows
    # and are sliced off below.
    # TODO(synk): DMA rectangular (Bt, Tc, I) tiles straight from the natural
    # (B, T, I) layout inside a time-chunked pipeline to drop this extra pass.
    x_tbi = jnp.transpose(x, (1, 0, 2))
    x_tbi = jnp.pad(x_tbi, ((0, 0), (0, Bp - B), (0, 0)))
    x_tiles = (x_tbi.reshape(T, nb, Bt, I)
                    .transpose(1, 0, 2, 3)
                    .reshape(nb * T * Bt, I)
                    .astype(input_dtype))

    wxh_p = jnp.pad(w_xh.T, ((0, 0), (0, Hp - H))).astype(input_dtype)
    whh_p = jnp.pad(w_hh.T, ((0, Hp - H), (0, Hp - H))).astype(jnp.float32)
    bh_p = jnp.pad(b_h, (0, Hp - H)).astype(jnp.float32).reshape(1, Hp)
    wfc_p = jnp.pad(w_fc.T, ((0, Hp - H), (0, Cp - C))).astype(jnp.float32)
    bfc_p = jnp.pad(b_fc, (0, Cp - C)).astype(jnp.float32).reshape(1, Cp)

    in_itemsize = jnp.dtype(input_dtype).itemsize
    vmem_need = (
        2 * _tile_bytes((T * Bt, I), in_itemsize)    # x tile (double-buffered)
        + 2 * _tile_bytes((I, Hp), in_itemsize)
        + 2 * _tile_bytes((Hp, Hp), 4)
        + 2 * _tile_bytes((1, Hp), 4)
        + 2 * _tile_bytes((Hp, Cp), 4)
        + 2 * _tile_bytes((1, Cp), 4)
        + 2 * _tile_bytes((Bt, Cp), 4)               # out tile
        + _tile_bytes((T * Bt, Hp), 4)               # u scratch
    )
    vmem_limit = int(min(max(2 * vmem_need, 8 << 20), 64 << 20))

    out = pl.pallas_call(
        rnn_kernel,
        out_shape=jax.ShapeDtypeStruct((Bp, Cp), jnp.float32),
        grid_spec=pltpu.PrefetchScalarGridSpec(
            num_scalar_prefetch=0,
            grid=(nb,),
            in_specs=[
                pl.BlockSpec((T * Bt, I), lambda b: (b, 0)),
                pl.BlockSpec((I, Hp), lambda b: (0, 0)),
                pl.BlockSpec((Hp, Hp), lambda b: (0, 0)),
                pl.BlockSpec((1, Hp), lambda b: (0, 0)),
                pl.BlockSpec((Hp, Cp), lambda b: (0, 0)),
                pl.BlockSpec((1, Cp), lambda b: (0, 0)),
            ],
            out_specs=pl.BlockSpec((Bt, Cp), lambda b: (b, 0)),
            scratch_shapes=[pltpu.VMEM((T * Bt, Hp), jnp.float32)],
        ),
        compiler_params=pltpu.CompilerParams(
            dimension_semantics=("parallel",),
            vmem_limit_bytes=vmem_limit,
        ),
    )(x_tiles, wxh_p, whh_p, bh_p, wfc_p, bfc_p)

    return out[:B, :C][:, None, :]   # unsqueeze(1) -> (B, 1, C)


def vanilla_rnn_reference(x, w_xh, w_hh, b_h, w_fc, b_fc):
    """Pure-JAX reference mirroring the PyTorch forward exactly (f32)."""
    B, T, I = x.shape
    H = w_xh.shape[0]
    h = jnp.zeros((B, H), dtype=jnp.float32)
    for t in range(T):
        h = jax.nn.relu(x[:, t, :] @ w_xh.T + h @ w_hh.T + b_h)
    out = h @ w_fc.T + b_fc
    return out[:, None, :]


if __name__ == "__main__":
    # Small shapes consistent with the module's forward.
    B, T, I, H, C = 2, 8, 16, 32, 10

    key = jax.random.PRNGKey(0)
    kx, k1, k2, k3, k4 = jax.random.split(key, 5)

    x = jax.random.normal(kx, (B, T, I), dtype=jnp.float32)
    w_xh = jax.random.normal(k1, (H, I), dtype=jnp.float32) * 0.1
    w_hh = jax.random.normal(k2, (H, H), dtype=jnp.float32) * 0.1
    b_h = jnp.zeros((H,), dtype=jnp.float32)
    w_fc = jax.random.normal(k3, (C, H), dtype=jnp.float32) * 0.1
    b_fc = jax.random.normal(k4, (C,), dtype=jnp.float32) * 0.1

    ref = vanilla_rnn_reference(x, w_xh, w_hh, b_h, w_fc, b_fc)

    # Exact path (f32 Phase 1) — tight tolerance.
    out_f32 = jax.block_until_ready(
        vanilla_rnn_forward(x, w_xh, w_hh, b_h, w_fc, b_fc,
                            input_dtype=jnp.float32))
    assert out_f32.shape == (B, 1, C), out_f32.shape
    assert jnp.allclose(out_f32, ref, atol=1e-4, rtol=1e-4), "f32 mismatch"

    # Fast path (bf16 x / W_xh for Phase 1, f32 accumulation & recurrence).
    out_bf16 = jax.block_until_ready(
        vanilla_rnn_forward(x, w_xh, w_hh, b_h, w_fc, b_fc,
                            input_dtype=jnp.bfloat16))
    assert out_bf16.shape == (B, 1, C), out_bf16.shape
    assert jnp.allclose(out_bf16, ref, atol=2e-2, rtol=2e-2), "bf16 mismatch"

    print("KERNEL_OK")
</pallas_src>

<mosaic_0001>
module attributes {stable_mosaic.version = 11 : i64} {
  func.func @rnn_kernel(%arg0: i32, %arg1: memref<64x16xf32, #tpu.memory_space<vmem>>, %arg2: memref<16x128xf32, #tpu.memory_space<vmem>>, %arg3: memref<128x128xf32, #tpu.memory_space<vmem>>, %arg4: memref<1x128xf32, #tpu.memory_space<vmem>>, %arg5: memref<128x128xf32, #tpu.memory_space<vmem>>, %arg6: memref<1x128xf32, #tpu.memory_space<vmem>>, %arg7: memref<8x128xf32, #tpu.memory_space<vmem>>, %arg8: memref<64x128xf32, #tpu.memory_space<vmem>>) attributes {dimension_semantics = [#tpu.dimension_semantics<parallel>], iteration_bounds = array<i64: 1>, scalar_prefetch = 0 : i64, scratch_operands = 1 : i64, tpu.core_type = #tpu.core_type<tc>, window_params = [{transform_indices = @transform_0, window_bounds = array<i64: 64, 16>}, {pipeline_mode = #tpu.pipeline_mode<synchronous>, transform_indices = @transform_1, window_bounds = array<i64: 16, 128>}, {pipeline_mode = #tpu.pipeline_mode<synchronous>, transform_indices = @transform_2, window_bounds = array<i64: 128, 128>}, {pipeline_mode = #tpu.pipeline_mode<synchronous>, transform_indices = @transform_3, window_bounds = array<i64: 1, 128>}, {pipeline_mode = #tpu.pipeline_mode<synchronous>, transform_indices = @transform_4, window_bounds = array<i64: 128, 128>}, {pipeline_mode = #tpu.pipeline_mode<synchronous>, transform_indices = @transform_5, window_bounds = array<i64: 1, 128>}, {transform_indices = @transform_6, window_bounds = array<i64: 8, 128>}]} {
    %c0 = arith.constant 0 : index
    %c0_0 = arith.constant 0 : index
    %0 = vector.load %arg1[%c0, %c0_0] : memref<64x16xf32, #tpu.memory_space<vmem>>, vector<64x16xf32>
    %c0_1 = arith.constant 0 : index
    %c0_2 = arith.constant 0 : index
    %1 = vector.load %arg2[%c0_1, %c0_2] : memref<16x128xf32, #tpu.memory_space<vmem>>, vector<16x128xf32>
    %cst = arith.constant dense<0.000000e+00> : vector<64x128xf32>
    %2 = tpu.matmul %0, %1, %cst {dimension_numbers = #tpu.dot_dimension_numbers<[1], [0], [0], [1], [0, 0, 1, 1], [], []>} : vector<64x16xf32>, vector<16x128xf32>, vector<64x128xf32> -> vector<64x128xf32>
    %c0_3 = arith.constant 0 : index
    %c0_4 = arith.constant 0 : index
    %3 = vector.load %arg4[%c0_3, %c0_4] : memref<1x128xf32, #tpu.memory_space<vmem>>, vector<1x128xf32>
    %4 = vector.broadcast %3 : vector<1x128xf32> to vector<64x128xf32>
    %5 = arith.addf %2, %4 : vector<64x128xf32>
    %c0_5 = arith.constant 0 : index
    %c0_6 = arith.constant 0 : index
    %6 = vector.load %arg8[%c0_5, %c0_6] : memref<64x128xf32, #tpu.memory_space<vmem>>, vector<64x128xf32>
    tpu.vector_store %arg8[%c0_5, %c0_6], %5 {strides = array<i32>} : memref<64x128xf32, #tpu.memory_space<vmem>>, vector<64x128xf32>,
    %c0_7 = arith.constant 0 : index
    %c0_8 = arith.constant 0 : index
    %7 = vector.load %arg3[%c0_7, %c0_8] : memref<128x128xf32, #tpu.memory_space<vmem>>, vector<128x128xf32>
    %cst_9 = arith.constant 0.000000e+00 : f32
    %8 = vector.broadcast %cst_9 : f32 to vector<8x128xf32>
    %c0_i32 = arith.constant 0 : i32
    %c8_i32 = arith.constant 8 : i32
    %9 = arith.muli %c0_i32, %c8_i32 : i32
    %10 = tpu.assume_multiple %9, 8 : i32
    %11 = arith.index_cast %10 : i32 to index
    %c0_10 = arith.constant 0 : index
    %12 = vector.load %arg8[%11, %c0_10] : memref<64x128xf32, #tpu.memory_space<vmem>>, vector<8x128xf32>
    %cst_11 = arith.constant dense<0.000000e+00> : vector<8x128xf32>
    %13 = tpu.matmul %8, %7, %cst_11 {dimension_numbers = #tpu.dot_dimension_numbers<[1], [0], [0], [1], [0, 0, 1, 1], [], []>} : vector<8x128xf32>, vector<128x128xf32>, vector<8x128xf32> -> vector<8x128xf32>
    %14 = arith.addf %12, %13 : vector<8x128xf32>
    %cst_12 = arith.constant 0.000000e+00 : f32
    %15 = vector.broadcast %cst_12 : f32 to vector<8x128xf32>
    %16 = arith.maximumf %14, %15 : vector<8x128xf32>
    %c1_i32 = arith.constant 1 : i32
    %c8_i32_13 = arith.constant 8 : i32
    %17 = arith.muli %c1_i32, %c8_i32_13 : i32
    %18 = tpu.assume_multiple %17, 8 : i32
    %19 = arith.index_cast %18 : i32 to index
    %c0_14 = arith.constant 0 : index
    %20 = vector.load %arg8[%19, %c0_14] : memref<64x128xf32, #tpu.memory_space<vmem>>, vector<8x128xf32>
    %cst_15 = arith.constant dense<0.000000e+00> : vector<8x128xf32>
    %21 = tpu.matmul %16, %7, %cst_15 {dimension_numbers = #tpu.dot_dimension_numbers<[1], [0], [0], [1], [0, 0, 1, 1], [], []>} : vector<8x128xf32>, vector<128x128xf32>, vector<8x128xf32> -> vector<8x128xf32>
    %22 = arith.addf %20, %21 : vector<8x128xf32>
    %cst_16 = arith.constant 0.000000e+00 : f32
    %23 = vector.broadcast %cst_16 : f32 to vector<8x128xf32>
    %24 = arith.maximumf %22, %23 : vector<8x128xf32>
    %c2_i32 = arith.constant 2 : i32
    %c8_i32_17 = arith.constant 8 : i32
    %25 = arith.muli %c2_i32, %c8_i32_17 : i32
    %26 = tpu.assume_multiple %25, 8 : i32
    %27 = arith.index_cast %26 : i32 to index
    %c0_18 = arith.constant 0 : index
    %28 = vector.load %arg8[%27, %c0_18] : memref<64x128xf32, #tpu.memory_space<vmem>>, vector<8x128xf32>
    %cst_19 = arith.constant dense<0.000000e+00> : vector<8x128xf32>
    %29 = tpu.matmul %24, %7, %cst_19 {dimension_numbers = #tpu.dot_dimension_numbers<[1], [0], [0], [1], [0, 0, 1, 1], [], []>} : vector<8x128xf32>, vector<128x128xf32>, vector<8x128xf32> -> vector<8x128xf32>
    %30 = arith.addf %28, %29 : vector<8x128xf32>
    %cst_20 = arith.constant 0.000000e+00 : f32
    %31 = vector.broadcast %cst_20 : f32 to vector<8x128xf32>
    %32 = arith.maximumf %30, %31 : vector<8x128xf32>
    %c3_i32 = arith.constant 3 : i32
    %c8_i32_21 = arith.constant 8 : i32
    %33 = arith.muli %c3_i32, %c8_i32_21 : i32
    %34 = tpu.assume_multiple %33, 8 : i32
    %35 = arith.index_cast %34 : i32 to index
    %c0_22 = arith.constant 0 : index
    %36 = vector.load %arg8[%35, %c0_22] : memref<64x128xf32, #tpu.memory_space<vmem>>, vector<8x128xf32>
    %cst_23 = arith.constant dense<0.000000e+00> : vector<8x128xf32>
    %37 = tpu.matmul %32, %7, %cst_23 {dimension_numbers = #tpu.dot_dimension_numbers<[1], [0], [0], [1], [0, 0, 1, 1], [], []>} : vector<8x128xf32>, vector<128x128xf32>, vector<8x128xf32> -> vector<8x128xf32>
    %38 = arith.addf %36, %37 : vector<8x128xf32>
    %cst_24 = arith.constant 0.000000e+00 : f32
    %39 = vector.broadcast %cst_24 : f32 to vector<8x128xf32>
    %40 = arith.maximumf %38, %39 : vector<8x128xf32>
    %c4_i32 = arith.constant 4 : i32
    %c8_i32_25 = arith.constant 8 : i32
    %41 = arith.muli %c4_i32, %c8_i32_25 : i32
    %42 = tpu.assume_multiple %41, 8 : i32
    %43 = arith.index_cast %42 : i32 to index
    %c0_26 = arith.constant 0 : index
    %44 = vector.load %arg8[%43, %c0_26] : memref<64x128xf32, #tpu.memory_space<vmem>>, vector<8x128xf32>
    %cst_27 = arith.constant dense<0.000000e+00> : vector<8x128xf32>
    %45 = tpu.matmul %40, %7, %cst_27 {dimension_numbers = #tpu.dot_dimension_numbers<[1], [0], [0], [1], [0, 0, 1, 1], [], []>} : vector<8x128xf32>, vector<128x128xf32>, vector<8x128xf32> -> vector<8x128xf32>
    %46 = arith.addf %44, %45 : vector<8x128xf32>
    %cst_28 = arith.constant 0.000000e+00 : f32
    %47 = vector.broadcast %cst_28 : f32 to vector<8x128xf32>
    %48 = arith.maximumf %46, %47 : vector<8x128xf32>
    %c5_i32 = arith.constant 5 : i32
    %c8_i32_29 = arith.constant 8 : i32
    %49 = arith.muli %c5_i32, %c8_i32_29 : i32
    %50 = tpu.assume_multiple %49, 8 : i32
    %51 = arith.index_cast %50 : i32 to index
    %c0_30 = arith.constant 0 : index
    %52 = vector.load %arg8[%51, %c0_30] : memref<64x128xf32, #tpu.memory_space<vmem>>, vector<8x128xf32>
    %cst_31 = arith.constant dense<0.000000e+00> : vector<8x128xf32>
    %53 = tpu.matmul %48, %7, %cst_31 {dimension_numbers = #tpu.dot_dimension_numbers<[1], [0], [0], [1], [0, 0, 1, 1], [], []>} : vector<8x128xf32>, vector<128x128xf32>, vector<8x128xf32> -> vector<8x128xf32>
    %54 = arith.addf %52, %53 : vector<8x128xf32>
    %cst_32 = arith.constant 0.000000e+00 : f32
    %55 = vector.broadcast %cst_32 : f32 to vector<8x128xf32>
    %56 = arith.maximumf %54, %55 : vector<8x128xf32>
    %c6_i32 = arith.constant 6 : i32
    %c8_i32_33 = arith.constant 8 : i32
    %57 = arith.muli %c6_i32, %c8_i32_33 : i32
    %58 = tpu.assume_multiple %57, 8 : i32
    %59 = arith.index_cast %58 : i32 to index
    %c0_34 = arith.constant 0 : index
    %60 = vector.load %arg8[%59, %c0_34] : memref<64x128xf32, #tpu.memory_space<vmem>>, vector<8x128xf32>
    %cst_35 = arith.constant dense<0.000000e+00> : vector<8x128xf32>
    %61 = tpu.matmul %56, %7, %cst_35 {dimension_numbers = #tpu.dot_dimension_numbers<[1], [0], [0], [1], [0, 0, 1, 1], [], []>} : vector<8x128xf32>, vector<128x128xf32>, vector<8x128xf32> -> vector<8x128xf32>
    %62 = arith.addf %60, %61 : vector<8x128xf32>
    %cst_36 = arith.constant 0.000000e+00 : f32
    %63 = vector.broadcast %cst_36 : f32 to vector<8x128xf32>
    %64 = arith.maximumf %62, %63 : vector<8x128xf32>
    %c7_i32 = arith.constant 7 : i32
    %c8_i32_37 = arith.constant 8 : i32
    %65 = arith.muli %c7_i32, %c8_i32_37 : i32
    %66 = tpu.assume_multiple %65, 8 : i32
    %67 = arith.index_cast %66 : i32 to index
    %c0_38 = arith.constant 0 : index
    %68 = vector.load %arg8[%67, %c0_38] : memref<64x128xf32, #tpu.memory_space<vmem>>, vector<8x128xf32>
    %cst_39 = arith.constant dense<0.000000e+00> : vector<8x128xf32>
    %69 = tpu.matmul %64, %7, %cst_39 {dimension_numbers = #tpu.dot_dimension_numbers<[1], [0], [0], [1], [0, 0, 1, 1], [], []>} : vector<8x128xf32>, vector<128x128xf32>, vector<8x128xf32> -> vector<8x128xf32>
    %70 = arith.addf %68, %69 : vector<8x128xf32>
    %cst_40 = arith.constant 0.000000e+00 : f32
    %71 = vector.broadcast %cst_40 : f32 to vector<8x128xf32>
    %72 = arith.maximumf %70, %71 : vector<8x128xf32>
    %c8_i32_41 = arith.constant 8 : i32
    %c0_42 = arith.constant 0 : index
    %c0_43 = arith.constant 0 : index
    %73 = vector.load %arg5[%c0_42, %c0_43] : memref<128x128xf32, #tpu.memory_space<vmem>>, vector<128x128xf32>
    %cst_44 = arith.constant dense<0.000000e+00> : vector<8x128xf32>
    %74 = tpu.matmul %72, %73, %cst_44 {dimension_numbers = #tpu.dot_dimension_numbers<[1], [0], [0], [1], [0, 0, 1, 1], [], []>} : vector<8x128xf32>, vector<128x128xf32>, vector<8x128xf32> -> vector<8x128xf32>
    %c0_45 = arith.constant 0 : index
    %c0_46 = arith.constant 0 : index
    %75 = vector.load %arg6[%c0_45, %c0_46] : memref<1x128xf32, #tpu.memory_space<vmem>>, vector<1x128xf32>
    %76 = vector.broadcast %75 : vector<1x128xf32> to vector<8x128xf32>
    %77 = arith.addf %74, %76 : vector<8x128xf32>
    %c0_47 = arith.constant 0 : index
    %c0_48 = arith.constant 0 : index
    %78 = vector.load %arg7[%c0_47, %c0_48] : memref<8x128xf32, #tpu.memory_space<vmem>>, vector<8x128xf32>
    tpu.vector_store %arg7[%c0_47, %c0_48], %77 {strides = array<i32>} : memref<8x128xf32, #tpu.memory_space<vmem>>, vector<8x128xf32>,
    return
  }
  func.func @transform_0(%arg0: i32) -> (i32, i32) {
    %c0_i32 = arith.constant 0 : i32
    %c0_i32_0 = arith.constant 0 : i32
    return %arg0, %c0_i32 : i32, i32
  }
  func.func @transform_1(%arg0: i32) -> (i32, i32) {
    %c0_i32 = arith.constant 0 : i32
    %c0_i32_0 = arith.constant 0 : i32
    %c0_i32_1 = arith.constant 0 : i32
    return %c0_i32, %c0_i32_0 : i32, i32
  }
  func.func @transform_2(%arg0: i32) -> (i32, i32) {
    %c0_i32 = arith.constant 0 : i32
    %c0_i32_0 = arith.constant 0 : i32
    %c0_i32_1 = arith.constant 0 : i32
    return %c0_i32, %c0_i32_0 : i32, i32
  }
  func.func @transform_3(%arg0: i32) -> (i32, i32) {
    %c0_i32 = arith.constant 0 : i32
    %c0_i32_0 = arith.constant 0 : i32
    %c0_i32_1 = arith.constant 0 : i32
    return %c0_i32, %c0_i32_0 : i32, i32
  }
  func.func @transform_4(%arg0: i32) -> (i32, i32) {
    %c0_i32 = arith.constant 0 : i32
    %c0_i32_0 = arith.constant 0 : i32
    %c0_i32_1 = arith.constant 0 : i32
    return %c0_i32, %c0_i32_0 : i32, i32
  }
  func.func @transform_5(%arg0: i32) -> (i32, i32) {
    %c0_i32 = arith.constant 0 : i32
    %c0_i32_0 = arith.constant 0 : i32
    %c0_i32_1 = arith.constant 0 : i32
    return %c0_i32, %c0_i32_0 : i32, i32
  }
  func.func @transform_6(%arg0: i32) -> (i32, i32) {
    %c0_i32 = arith.constant 0 : i32
    %c0_i32_0 = arith.constant 0 : i32
    return %arg0, %c0_i32 : i32, i32
  }
}

</mosaic_0001>

<bundles_post_ra>
// kernel: vanilla_rnn_forward.1
= control target key start
LH: loop header
LB: loop body
LE: loop exit
PB: predicated region body
PF: predicated region fallthrough
CT: control target
= control target key end

     0   :  { %v1610_v0 = vmov 0.0|0.0   ;;  %vm1611_vm0 = vmmov 0   ;;  %v1612_v4 = vmov 0.0   ;;  %vm40_vm1 = vcmask 130048   ;;  %s1987_s2 = inlined_call_operand.vmem [shape: f32[128,128], index: 2, kind: input, shape index: {}]   ;;  %s1988_s1 = inlined_call_operand.vmem [shape: f32[16,128], index: 1, kind: input, shape index: {}]   ;;  %s1989_s0 = inlined_call_operand.vmem [shape: f32[64,16], index: 0, kind: input, shape index: {}]   ;;  %s1990_s3 = inlined_call_operand.vmem [shape: f32[1,128], index: 3, kind: input, shape index: {}]   ;;  %s1991_s4 = inlined_call_operand.vmem [shape: f32[128,128], index: 4, kind: input, shape index: {}]   ;;  %s1992_s5 = inlined_call_operand.vmem [shape: f32[1,128], index: 5, kind: input, shape index: {}]   ;;  %s1993_s6 = inlined_call_operand.vmem [shape: f32[8,128], index: 6, kind: output, shape index: {}]  }
   0x1   :  { %1391 = vmatprep.subr.bf16.mxu1 %v1610_v0  ;;  %v178_v1 = vld [vmem:[%s1987_s2] sm:$0xff]  ;;  %v179_v2 = vld [vmem:[%s1987_s2 + $0x8] sm:$0xff]  ;;  %v180_v3 = vld [vmem:[%s1987_s2 + $0x10] sm:$0xff]  ;;  %1104 = vmatprep.mubr.msk.f32.mxu1 %vm1611_vm0, %v1612_v4 }
   0x2   :  { %v1660_v5 = vpack.c.bf16 %v179_v2, %v178_v1  ;;  %v181_v6 = vld [vmem:[%s1987_s2 + $0x18] sm:$0xff]  ;;  %v182_v8 = vld [vmem:[%s1987_s2 + $0x20] sm:$0xff]  ;;  %v183_v9 = vld [vmem:[%s1987_s2 + $0x28] sm:$0xff] }
   0x3   :  { %v1666_v7 = vpack.c.bf16 %v181_v6, %v180_v3  ;;  %v31_v10 = vld [vmem:[%s1988_s1] sm:$0xff]  ;;  %v32_v11 = vld [vmem:[%s1988_s1 + $0x8] sm:$0xff]  ;;  %v1686_v14 = vpack.c.bf16 %v183_v9, %v182_v8  ;;  %v184_v15 = vld [vmem:[%s1987_s2 + $0x30] sm:$0xff] }
   0x4   :  { %1393 = vmatpush3.bf16.msra.mxu1 %v1660_v5  ;;  %v1387_v12 = vpack.c.bf16 %v32_v11, %v31_v10  ;;  %v23_v13 = vld [vmem:[%s1989_s0] sm:$0xff]  ;;  %v185_v16 = vld [vmem:[%s1987_s2 + $0x38] sm:$0xff]  ;;  %v24_v17 = vld [vmem:[%s1989_s0 + $0x8] sm:$0xff] }
   0x5   :  { %1394 = vmatprep.subr.bf16.mxu1 %v1610_v0  ;;  %1060 = vmatprep.mubr.msk.f32.mxu0 %vm40_vm1, %v23_v13  ;;  %v25_v18 = vld [vmem:[%s1989_s0 + $0x10] sm:$0xff]  ;;  %v1703_v19 = vpack.c.bf16 %v185_v16, %v184_v15  ;;  %v186_v20 = vld [vmem:[%s1987_s2 + $0x40] sm:$0xff]  ;;  %v187_v21 = vld [vmem:[%s1987_s2 + $0x48] sm:$0xff] }
   0x6   :  { %1388 = vmatprep.subr.bf16.mxu0 %v1387_v12  ;;  %v26_v22 = vld [vmem:[%s1989_s0 + $0x18] sm:$0xff]  ;;  %v27_v23 = vld [vmem:[%s1989_s0 + $0x20] sm:$0xff]  ;;  %v1723_v24 = vpack.c.bf16 %v187_v21, %v186_v20  ;;  %v188_v25 = vld [vmem:[%s1987_s2 + $0x50] sm:$0xff] }
   0x7   :  { %1390 = vmatpush3.bf16.msra.mxu0 %v1387_v12  ;;  %v189_v26 = vld [vmem:[%s1987_s2 + $0x58] sm:$0xff]  ;;  %v190_v28 = vld [vmem:[%s1987_s2 + $0x60] sm:$0xff]  ;;  %v191_v29 = vld [vmem:[%s1987_s2 + $0x68] sm:$0xff] }
   0x8   :  { %1396 = vmatpush3.bf16.msra.mxu1 %v1666_v7  ;;  %1415 = vmatprep.subr.bf16.mxu0 %v1610_v0  ;;  %v1737_v27 = vpack.c.bf16 %v189_v26, %v188_v25  ;;  %v1749_v30 = vpack.c.bf16 %v191_v29, %v190_v28  ;;  %v192_v31 = vld [vmem:[%s1987_s2 + $0x70] sm:$0xff]  ;;  %v193_v32 = vld [vmem:[%s1987_s2 + $0x78] sm:$0xff]  ;;  %v28_v34 = vld [vmem:[%s1989_s0 + $0x28] sm:$0xff] }
   0x9   :  { %1397 = vmatprep.subr.bf16.mxu1 %v1610_v0  ;;  %v1761_v33 = vpack.c.bf16 %v193_v32, %v192_v31  ;;  %v29_v35 = vld [vmem:[%s1989_s0 + $0x30] sm:$0xff]  ;;  %v30_v36 = vld [vmem:[%s1989_s0 + $0x38] sm:$0xff]  ;;  %v1812_v41 = vld [vmem:[%s1990_s3] ss:$0 sm:$0xff] }
   0xa   :  { %1061 = vmatmul.mubr.msk.f32.vlgmr.msra.gmra.mrb[0].mxu0 %vm40_vm1, %v24_v17  ;;  %v786_v15 = vld [vmem:[%s1991_s4 + $0x8] sm:$0xff]  ;;  %v787_v16 = vld [vmem:[%s1991_s4 + $0x10] sm:$0xff]  ;;  %v793_v25 = vld [vmem:[%s1991_s4 + $0x40] sm:$0xff] }
   0xb   :  { %1417 = vmatpush3.bf16.msra.mxu0 %v1660_v5  ;;  %1063 = vmatprep.mubr.msk.f32.mxu0 %vm40_vm1, %v25_v18  ;;  %v788_v18 = vld [vmem:[%s1991_s4 + $0x18] sm:$0xff]  ;;  %v790_v20 = vld [vmem:[%s1991_s4 + $0x28] sm:$0xff]  ;;  %v795_v28 = vld [vmem:[%s1991_s4 + $0x50] sm:$0xff] }
   0xc   :  { %1399 = vmatpush3.bf16.msra.mxu1 %v1686_v14  ;;  %1418 = vmatprep.subr.bf16.mxu0 %v1610_v0  ;;  %v794_v26 = vld [vmem:[%s1991_s4 + $0x48] sm:$0xff]  ;;  %v796_v29 = vld [vmem:[%s1991_s4 + $0x58] sm:$0xff]  ;;  %v797_v31 = vld [vmem:[%s1991_s4 + $0x60] sm:$0xff] }
   0xd   :  { %1400 = vmatprep.subr.bf16.mxu1 %v1610_v0  ;;  %v798_v32 = vld [vmem:[%s1991_s4 + $0x68] sm:$0xff] }
   0xe   :  { %1064 = vmatmul.mubr.msk.f32.gmra.mrb[2].mxu0 %vm40_vm1, %v26_v22  ;;  %v791_v22 = vld [vmem:[%s1991_s4 + $0x30] sm:$0xff] }
   0xf   :  { %1420 = vmatpush3.bf16.msra.mxu0 %v1666_v7  ;;  %1066 = vmatprep.mubr.msk.f32.mxu0 %vm40_vm1, %v27_v23  ;;  %v792_v23 = vld [vmem:[%s1991_s4 + $0x38] sm:$0xff] }
  0x10   :  { %1402 = vmatpush3.bf16.msra.mxu1 %v1703_v19  ;;  %1421 = vmatprep.subr.bf16.mxu0 %v1610_v0 }
  0x11   :  { %1403 = vmatprep.subr.bf16.mxu1 %v1610_v0 }
  0x12   :  { %1067 = vmatmul.mubr.msk.f32.gmra.mrb[4].mxu0 %vm40_vm1, %v28_v34 }
  0x13   :  { %1423 = vmatpush3.bf16.msra.mxu0 %v1686_v14  ;;  %1069 = vmatprep.mubr.msk.f32.mxu0 %vm40_vm1, %v29_v35 }
  0x14   :  { %1405 = vmatpush3.bf16.msra.mxu1 %v1723_v24  ;;  %1424 = vmatprep.subr.bf16.mxu0 %v1610_v0 }
  0x15   :  { %1406 = vmatprep.subr.bf16.mxu1 %v1610_v0 }
  0x16   :  { %1070 = vmatmul.mubr.msk.f32.gmra.mrb[6].mxu0 %vm40_vm1, %v30_v36 }
  0x17   :  { %1426 = vmatpush3.bf16.msra.mxu0 %v1703_v19  ;;  %1139 = vmatprep.mubr.msk.f32.mxu0 %vm1611_vm0, %v1612_v4 }
  0x18   :  { %1408 = vmatpush3.bf16.msra.mxu1 %v1737_v27  ;;  %1427 = vmatprep.subr.bf16.mxu0 %v1610_v0 }
  0x19   :  { %1409 = vmatprep.subr.bf16.mxu1 %v1610_v0 }
  0x1b   :  { %1429 = vmatpush3.bf16.msra.mxu0 %v1723_v24 }
  0x1c   :  { %1411 = vmatpush3.bf16.msra.mxu1 %v1749_v30  ;;  %1430 = vmatprep.subr.bf16.mxu0 %v1610_v0 }
  0x1d   :  { %1412 = vmatprep.subr.bf16.mxu1 %v1610_v0 }
  0x1f   :  { %1432 = vmatpush3.bf16.msra.mxu0 %v1737_v27 }
  0x20   :  { %1414 = vmatpush3.bf16.msra.mxu1 %v1761_v33  ;;  %1433 = vmatprep.subr.bf16.mxu0 %v1610_v0 }
  0x21   :  { %1439 = vmatprep.subr.bf16.mxu1 %v1610_v0 }
  0x23   :  { %1105 = vmatmul.mubr.f32.vlgmr.msra.gmra.mrb[0].mxu1 %v1612_v4  ;;  %1435 = vmatpush3.bf16.msra.mxu0 %v1749_v30 }
  0x24   :  { %1441 = vmatpush3.bf16.msra.mxu1 %v1660_v5  ;;  %1174 = vmatprep.mubr.msk.f32.mxu1 %vm1611_vm0, %v1612_v4 }
  0x25   :  { %1442 = vmatprep.subr.bf16.mxu1 %v1610_v0  ;;  %1436 = vmatprep.subr.bf16.mxu0 %v1610_v0 }
  0x27   :  { %1438 = vmatpush3.bf16.msra.mxu0 %v1761_v33 }
  0x28   :  { %1444 = vmatpush3.bf16.msra.mxu1 %v1666_v7  ;;  %1463 = vmatprep.subr.bf16.mxu0 %v1610_v0 }
  0x29   :  { %1445 = vmatprep.subr.bf16.mxu1 %v1610_v0 }
  0x2c   :  { %1447 = vmatpush3.bf16.msra.mxu1 %v1686_v14 }
  0x2d   :  { %1448 = vmatprep.subr.bf16.mxu1 %v1610_v0 }
  0x30   :  { %1450 = vmatpush3.bf16.msra.mxu1 %v1703_v19 }
  0x31   :  { %1451 = vmatprep.subr.bf16.mxu1 %v1610_v0 }
  0x34   :  { %1453 = vmatpush3.bf16.msra.mxu1 %v1723_v24 }
  0x35   :  { %1454 = vmatprep.subr.bf16.mxu1 %v1610_v0 }
  0x38   :  { %1456 = vmatpush3.bf16.msra.mxu1 %v1737_v27 }
  0x39   :  { %1457 = vmatprep.subr.bf16.mxu1 %v1610_v0 }
  0x3c   :  { %1459 = vmatpush3.bf16.msra.mxu1 %v1749_v30 }
  0x3d   :  { %1460 = vmatprep.subr.bf16.mxu1 %v1610_v0 }
  0x40   :  { %1462 = vmatpush3.bf16.msra.mxu1 %v1761_v33 }
  0x41   :  { %1487 = vmatprep.subr.bf16.mxu1 %v1610_v0 }
  0xdd   :  { %v1062_v37 = vpop.f32.mrb[0].mxu0 }
  0xde   :  { %v131_v38 = vpop.f32.mrb[1].mxu0  ;;  %v137_v51 = vadd.f32 %v1062_v37, %v1812_v41 }
  0xdf   :  { %v132_v42 = vadd.f32 %v1812_v41, %v131_v38 }
  0xe1   :  { %v1807_v39 = vpop.f32.mrb[2].mxu0 }
  0xe2   :  { %v141_v40 = vpop.f32.mrb[3].mxu0  ;;  %v147_v61 = vadd.f32 %v1807_v39, %v1812_v41  ;;  %v799_v39 = vld [vmem:[%s1991_s4 + $0x70] sm:$0xff] }
  0xe3   :  { %v142_v56 = vadd.f32 %v1812_v41, %v141_v40  ;;  %v800_v40 = vld [vmem:[%s1991_s4 + $0x78] sm:$0xff] }
  0xe5   :  { %v1833_v47 = vpop.f32.mrb[4].mxu0 }
  0xe6   :  { %v1835_v48 = vpop.f32.mrb[5].mxu0 }
  0xe7   :  { %v152_v3 = vadd.f32 %v1812_v41, %v1835_v48 }
  0xe9   :  { %v1837_v49 = vpop.f32.mrb[6].mxu0 }
  0xea   :  { %v1839_v50 = vpop.f32.mrb[7].mxu0 }
  0xeb   :  { %v162_v34 = vadd.f32 %v1812_v41, %v1839_v50 }
  0xf6   :  { %v261_v43 = vpop.f32.mrb[0].mxu1 }
  0xf7   :  { %v265_v44 = vadd.f32 %v261_v43, %v132_v42  ;;  %v1106_v45 = vpop.f32.mrb[1].mxu1  ;;  %v1605_v42 = vpack.c.bf16 %v800_v40, %v799_v39 }
  0xf9   :  { %v266_v46 = vmax.f32 %v265_v44, 0.0 }
  0xfb   :  { %1140 = vmatmul.mubr.f32.vlgmr.msra.gmra.mrb[8].mxu0 %v266_v46 }
  0xfc   :  { %1465 = vmatpush3.bf16.msra.mxu0 %v1660_v5  ;;  %1209 = vmatprep.mubr.msk.f32.mxu0 %vm1611_vm0, %v1612_v4 }
  0xfd   :  { %1466 = vmatprep.subr.bf16.mxu0 %v1610_v0 }
 0x100   :  { %1468 = vmatpush3.bf16.msra.mxu0 %v1666_v7 }
 0x101   :  { %1469 = vmatprep.subr.bf16.mxu0 %v1610_v0 }
 0x104   :  { %1471 = vmatpush3.bf16.msra.mxu0 %v1686_v14 }
 0x105   :  { %1472 = vmatprep.subr.bf16.mxu0 %v1610_v0 }
 0x108   :  { %1474 = vmatpush3.bf16.msra.mxu0 %v1703_v19 }
 0x109   :  { %1475 = vmatprep.subr.bf16.mxu0 %v1610_v0 }
 0x10c   :  { %1477 = vmatpush3.bf16.msra.mxu0 %v1723_v24 }
 0x10d   :  { %1478 = vmatprep.subr.bf16.mxu0 %v1610_v0 }
 0x110   :  { %1480 = vmatpush3.bf16.msra.mxu0 %v1737_v27 }
 0x111   :  { %1481 = vmatprep.subr.bf16.mxu0 %v1610_v0 }
 0x114   :  { %1483 = vmatpush3.bf16.msra.mxu0 %v1749_v30 }
 0x115   :  { %1484 = vmatprep.subr.bf16.mxu0 %v1610_v0 }
 0x118   :  { %1486 = vmatpush3.bf16.msra.mxu0 %v1761_v33 }
 0x119   :  { %1511 = vmatprep.subr.bf16.mxu0 %v1610_v0 }
 0x1ce   :  { %v335_v52 = vpop.f32.mrb[8].mxu0 }
 0x1cf   :  { %v339_v53 = vadd.f32 %v335_v52, %v137_v51  ;;  %v1141_v54 = vpop.f32.mrb[9].mxu0 }
 0x1d1   :  { %v340_v55 = vmax.f32 %v339_v53, 0.0 }
 0x1d3   :  { %1175 = vmatmul.mubr.f32.vlgmr.msra.gmra.mrb[2].mxu1 %v340_v55 }
 0x1d4   :  { %1489 = vmatpush3.bf16.msra.mxu1 %v1660_v5  ;;  %1244 = vmatprep.mubr.msk.f32.mxu1 %vm1611_vm0, %v1612_v4 }
 0x1d5   :  { %1490 = vmatprep.subr.bf16.mxu1 %v1610_v0 }
 0x1d8   :  { %1492 = vmatpush3.bf16.msra.mxu1 %v1666_v7 }
 0x1d9   :  { %1493 = vmatprep.subr.bf16.mxu1 %v1610_v0 }
 0x1dc   :  { %1495 = vmatpush3.bf16.msra.mxu1 %v1686_v14 }
 0x1dd   :  { %1496 = vmatprep.subr.bf16.mxu1 %v1610_v0 }
 0x1e0   :  { %1498 = vmatpush3.bf16.msra.mxu1 %v1703_v19 }
 0x1e1   :  { %1499 = vmatprep.subr.bf16.mxu1 %v1610_v0 }
 0x1e4   :  { %1501 = vmatpush3.bf16.msra.mxu1 %v1723_v24 }
 0x1e5   :  { %1502 = vmatprep.subr.bf16.mxu1 %v1610_v0 }
 0x1e8   :  { %1504 = vmatpush3.bf16.msra.mxu1 %v1737_v27 }
 0x1e9   :  { %1505 = vmatprep.subr.bf16.mxu1 %v1610_v0 }
 0x1ec   :  { %1507 = vmatpush3.bf16.msra.mxu1 %v1749_v30 }
 0x1ed   :  { %1508 = vmatprep.subr.bf16.mxu1 %v1610_v0 }
 0x1f0   :  { %1510 = vmatpush3.bf16.msra.mxu1 %v1761_v33 }
 0x1f1   :  { %1535 = vmatprep.subr.bf16.mxu1 %v1610_v0 }
 0x2a6   :  { %v409_v57 = vpop.f32.mrb[2].mxu1 }
 0x2a7   :  { %v413_v58 = vadd.f32 %v409_v57, %v142_v56  ;;  %v1176_v59 = vpop.f32.mrb[3].mxu1 }
 0x2a9   :  { %v414_v60 = vmax.f32 %v413_v58, 0.0 }
 0x2ab   :  { %1210 = vmatmul.mubr.f32.vlgmr.msra.gmra.mrb[10].mxu0 %v414_v60 }
 0x2ac   :  { %1513 = vmatpush3.bf16.msra.mxu0 %v1660_v5  ;;  %1279 = vmatprep.mubr.msk.f32.mxu0 %vm1611_vm0, %v1612_v4 }
 0x2ad   :  { %1514 = vmatprep.subr.bf16.mxu0 %v1610_v0 }
 0x2b0   :  { %1516 = vmatpush3.bf16.msra.mxu0 %v1666_v7 }
 0x2b1   :  { %1517 = vmatprep.subr.bf16.mxu0 %v1610_v0 }
 0x2b4   :  { %1519 = vmatpush3.bf16.msra.mxu0 %v1686_v14 }
 0x2b5   :  { %1520 = vmatprep.subr.bf16.mxu0 %v1610_v0 }
 0x2b8   :  { %1522 = vmatpush3.bf16.msra.mxu0 %v1703_v19 }
 0x2b9   :  { %1523 = vmatprep.subr.bf16.mxu0 %v1610_v0 }
 0x2bc   :  { %1525 = vmatpush3.bf16.msra.mxu0 %v1723_v24 }
 0x2bd   :  { %1526 = vmatprep.subr.bf16.mxu0 %v1610_v0 }
 0x2c0   :  { %1528 = vmatpush3.bf16.msra.mxu0 %v1737_v27 }
 0x2c1   :  { %1529 = vmatprep.subr.bf16.mxu0 %v1610_v0 }
 0x2c4   :  { %1531 = vmatpush3.bf16.msra.mxu0 %v1749_v30 }
 0x2c5   :  { %1532 = vmatprep.subr.bf16.mxu0 %v1610_v0 }
 0x2c8   :  { %1534 = vmatpush3.bf16.msra.mxu0 %v1761_v33 }
 0x2c9   :  { %1559 = vmatprep.subr.bf16.mxu0 %v1610_v0 }
 0x37e   :  { %v483_v62 = vpop.f32.mrb[10].mxu0 }
 0x37f   :  { %v487_v63 = vadd.f32 %v483_v62, %v147_v61  ;;  %v1211_v1 = vpop.f32.mrb[11].mxu0 }
 0x381   :  { %v488_v2 = vmax.f32 %v487_v63, 0.0 }
 0x383   :  { %1245 = vmatmul.mubr.f32.vlgmr.msra.gmra.mrb[4].mxu1 %v488_v2 }
 0x384   :  { %1537 = vmatpush3.bf16.msra.mxu1 %v1660_v5  ;;  %1314 = vmatprep.mubr.msk.f32.mxu1 %vm1611_vm0, %v1612_v4 }
 0x385   :  { %1538 = vmatprep.subr.bf16.mxu1 %v1610_v0 }
 0x388   :  { %1540 = vmatpush3.bf16.msra.mxu1 %v1666_v7 }
 0x389   :  { %1541 = vmatprep.subr.bf16.mxu1 %v1610_v0 }
 0x38c   :  { %1543 = vmatpush3.bf16.msra.mxu1 %v1686_v14 }
 0x38d   :  { %1544 = vmatprep.subr.bf16.mxu1 %v1610_v0 }
 0x390   :  { %1546 = vmatpush3.bf16.msra.mxu1 %v1703_v19 }
 0x391   :  { %1547 = vmatprep.subr.bf16.mxu1 %v1610_v0 }
 0x394   :  { %1549 = vmatpush3.bf16.msra.mxu1 %v1723_v24 }
 0x395   :  { %1550 = vmatprep.subr.bf16.mxu1 %v1610_v0 }
 0x398   :  { %1552 = vmatpush3.bf16.msra.mxu1 %v1737_v27 }
 0x399   :  { %1553 = vmatprep.subr.bf16.mxu1 %v1610_v0 }
 0x39c   :  { %1555 = vmatpush3.bf16.msra.mxu1 %v1749_v30 }
 0x39d   :  { %1556 = vmatprep.subr.bf16.mxu1 %v1610_v0 }
 0x3a0   :  { %1558 = vmatpush3.bf16.msra.mxu1 %v1761_v33 }
 0x3a1   :  { %1583 = vmatprep.subr.bf16.mxu1 %v1610_v0 }
 0x456   :  { %v557_v6 = vpop.f32.mrb[4].mxu1 }
 0x457   :  { %v561_v8 = vadd.f32 %v557_v6, %v152_v3  ;;  %v1246_v9 = vpop.f32.mrb[5].mxu1 }
 0x459   :  { %v562_v10 = vmax.f32 %v561_v8, 0.0 }
 0x45b   :  { %1280 = vmatmul.mubr.f32.vlgmr.msra.gmra.mrb[12].mxu0 %v562_v10 }
 0x45c   :  { %1561 = vmatpush3.bf16.msra.mxu0 %v1660_v5  ;;  %1349 = vmatprep.mubr.msk.f32.mxu0 %vm1611_vm0, %v1612_v4  ;;  %v157_v5 = vadd.f32 %v1833_v47, %v1812_v41  ;;  %v892_v47 = vld [vmem:[%s1992_s5] ss:$0 sm:$0xff] }
 0x45d   :  { %1562 = vmatprep.subr.bf16.mxu0 %v1610_v0 }
 0x460   :  { %1564 = vmatpush3.bf16.msra.mxu0 %v1666_v7 }
 0x461   :  { %1565 = vmatprep.subr.bf16.mxu0 %v1610_v0 }
 0x464   :  { %1567 = vmatpush3.bf16.msra.mxu0 %v1686_v14  ;;  %v785_v14 = vld [vmem:[%s1991_s4] sm:$0xff] }
 0x465   :  { %1568 = vmatprep.subr.bf16.mxu0 %v1610_v0  ;;  %v1584_v17 = vpack.c.bf16 %v786_v15, %v785_v14 }
 0x468   :  { %1570 = vmatpush3.bf16.msra.mxu0 %v1703_v19  ;;  %v1587_v19 = vpack.c.bf16 %v788_v18, %v787_v16 }
 0x469   :  { %1571 = vmatprep.subr.bf16.mxu0 %v1610_v0 }
 0x46c   :  { %1573 = vmatpush3.bf16.msra.mxu0 %v1723_v24  ;;  %v1593_v24 = vpack.c.bf16 %v792_v23, %v791_v22 }
 0x46d   :  { %1574 = vmatprep.subr.bf16.mxu0 %v1610_v0 }
 0x470   :  { %1576 = vmatpush3.bf16.msra.mxu0 %v1737_v27  ;;  %v1596_v27 = vpack.c.bf16 %v794_v26, %v793_v25 }
 0x471   :  { %1577 = vmatprep.subr.bf16.mxu0 %v1610_v0 }
 0x474   :  { %1579 = vmatpush3.bf16.msra.mxu0 %v1749_v30  ;;  %v1599_v30 = vpack.c.bf16 %v796_v29, %v795_v28 }
 0x475   :  { %1580 = vmatprep.subr.bf16.mxu0 %v1610_v0 }
 0x478   :  { %1582 = vmatpush3.bf16.msra.mxu0 %v1761_v33  ;;  %v1602_v33 = vpack.c.bf16 %v798_v32, %v797_v31 }
 0x52e   :  { %v631_v7 = vpop.f32.mrb[12].mxu0 }
 0x52f   :  { %v635_v11 = vadd.f32 %v631_v7, %v157_v5  ;;  %v1281_v12 = vpop.f32.mrb[13].mxu0 }
 0x531   :  { %v636_v13 = vmax.f32 %v635_v11, 0.0 }
 0x533   :  { %1315 = vmatmul.mubr.f32.vlgmr.msra.gmra.mrb[6].mxu1 %v636_v13 }
 0x534   :  { %1384 = vmatprep.mubr.msk.f32.mxu1 %vm1611_vm0, %v1612_v4  ;;  %1585 = vmatpush3.bf16.msra.mxu1 %v1584_v17  ;;  %v789_v4 = vld [vmem:[%s1991_s4 + $0x20] sm:$0xff] }
 0x535   :  { %1586 = vmatprep.subr.bf16.mxu1 %v1610_v0  ;;  %v1590_v21 = vpack.c.bf16 %v790_v20, %v789_v4 }
 0x538   :  { %1588 = vmatpush3.bf16.msra.mxu1 %v1587_v19 }
 0x539   :  { %1589 = vmatprep.subr.bf16.mxu1 %v1610_v0 }
 0x53c   :  { %1591 = vmatpush3.bf16.msra.mxu1 %v1590_v21 }
 0x53d   :  { %1592 = vmatprep.subr.bf16.mxu1 %v1610_v0 }
 0x540   :  { %1594 = vmatpush3.bf16.msra.mxu1 %v1593_v24 }
 0x541   :  { %1595 = vmatprep.subr.bf16.mxu1 %v1610_v0 }
 0x544   :  { %1597 = vmatpush3.bf16.msra.mxu1 %v1596_v27 }
 0x545   :  { %1598 = vmatprep.subr.bf16.mxu1 %v1610_v0 }
 0x548   :  { %1600 = vmatpush3.bf16.msra.mxu1 %v1599_v30 }
 0x549   :  { %1601 = vmatprep.subr.bf16.mxu1 %v1610_v0 }
 0x54c   :  { %1603 = vmatpush3.bf16.msra.mxu1 %v1602_v33 }
 0x54d   :  { %1604 = vmatprep.subr.bf16.mxu1 %v1610_v0  ;;  %v167_v0 = vadd.f32 %v1837_v49, %v1812_v41 }
 0x550   :  { %1606 = vmatpush3.bf16.msra.mxu1 %v1605_v42 }
 0x606   :  { %v705_v35 = vpop.f32.mrb[6].mxu1 }
 0x607   :  { %v709_v36 = vadd.f32 %v705_v35, %v162_v34  ;;  %v1316_v37 = vpop.f32.mrb[7].mxu1 }
 0x609   :  { %v710_v38 = vmax.f32 %v709_v36, 0.0 }
 0x60b   :  { %1350 = vmatmul.mubr.f32.vlgmr.msra.gmra.mrb[14].mxu0 %v710_v38 }
 0x6de   :  { %v779_v43 = vpop.f32.mrb[14].mxu0 }
 0x6df   :  { %v783_v44 = vadd.f32 %v779_v43, %v167_v0  ;;  %v1351_v45 = vpop.f32.mrb[15].mxu0 }
 0x6e1   :  { %v784_v46 = vmax.f32 %v783_v44, 0.0 }
 0x6e3   :  { %1385 = vmatmul.mubr.f32.vlgmr.msra.gmra.mrb[8].mxu1 %v784_v46 }
 0x7b6   :  { %v874_v48 = vpop.f32.mrb[8].mxu1 }
 0x7b7   :  { %v875_v50 = vadd.f32 %v892_v47, %v874_v48  ;;  %v1386_v51 = vpop.f32.mrb[9].mxu1 }
 0x7b9   :  { %878 = vst [vmem:[%s1993_s6] sm:$0xff] %v875_v50 }

</bundles_post_ra>
